<compile_context>
chip_gen: v6e
topology: v6e:2x2x1
jax: 0.10.0
libtpu: 0.0.40
codegen_flags: <defaults>
</compile_context>

<pallas_src>
import math

import jax
import jax.numpy as jnp
from jax.experimental import pallas as pl
from jax.experimental.pallas import tpu as pltpu


# --------------------------------------------------------------------------
# Pallas kernel: one grid step == `nb` images of the batch, all in VMEM.
# --------------------------------------------------------------------------
def _bottleneck_kernel(x_ref,             # (nb, H, W, Cin)        bf16
                       w1_ref, b1_ref,    # (Cin, Cmid) bf16, (1, Cmid) f32
                       w2_ref, b2_ref,    # (3, Cmid, 3*Cmid) bf16, (1, Cmid) f32
                       w3_ref, b3_ref,    # (Cmid, Cout) bf16, (1, Cout) f32
                       o_ref,             # (nb, H, W, Cout)       bf16
                       y1p_ref):          # VMEM scratch (nb, H+2, W, Cmid) bf16
    nb, H, W, Cin = x_ref.shape
    Cmid = w1_ref.shape[1]
    Cout = w3_ref.shape[1]
    M = nb * H * W

    x_blk = x_ref[...]
    x_bf = x_blk.reshape(M, Cin).astype(jnp.bfloat16)   # MXU operand
    x_f32 = x_blk.reshape(M, Cin).astype(jnp.float32)   # f32 residual path

    # ---- conv1 (1x1, BN scale folded into w1) + shift + ReLU ----------------
    y1 = jnp.dot(x_bf, w1_ref[...], preferred_element_type=jnp.float32)
    y1 = jnp.maximum(y1 + b1_ref[...], 0.0)

    # ---- conv2 (3x3, stride=1, pad=1) ---------------------------------------
    # Store y1 zero-padded along H only (non-tiled axis -> fully aligned store).
    y1_bf = y1.astype(jnp.bfloat16).reshape(nb, H, W, Cmid)
    zrow = jnp.zeros((nb, 1, W, Cmid), jnp.bfloat16)
    y1p_ref[...] = jnp.concatenate([zrow, y1_bf, zrow], axis=1)

    # One matmul per kernel row dy: (M, Cmid) x (Cmid, 3*Cmid) accumulated
    # in f32.  w2 is pre-laid-out so output lanes [dx*Cmid:(dx+1)*Cmid] hold
    # the dx-th column tap of the 3x3 kernel.
    acc = jnp.zeros((M, 3 * Cmid), jnp.float32)
    for dy in range(3):
        base = y1p_ref[:, dy:dy + H, :, :].reshape(M, Cmid)      # aligned read
        acc = acc + jnp.dot(base, w2_ref[dy],
                            preferred_element_type=jnp.float32)

    a0 = acc[:, 0 * Cmid:1 * Cmid].reshape(nb, H, W, Cmid)   # needs +1 shift in W
    a1 = acc[:, 1 * Cmid:2 * Cmid].reshape(nb, H, W, Cmid)   # centered
    a2 = acc[:, 2 * Cmid:3 * Cmid].reshape(nb, H, W, Cmid)   # needs -1 shift in W
    zcol = jnp.zeros((nb, H, 1, Cmid), jnp.float32)
    sh0 = jnp.concatenate([zcol, a0[:, :, :W - 1, :]], axis=2)   # a0[w-1]
    sh2 = jnp.concatenate([a2[:, :, 1:, :], zcol], axis=2)       # a2[w+1]
    y2 = jnp.maximum(a1 + sh0 + sh2 + b2_ref[...], 0.0)

    # ---- conv3 (1x1) + shift + residual add + ReLU --------------------------
    y2_bf = y2.reshape(M, Cmid).astype(jnp.bfloat16)
    y3 = jnp.dot(y2_bf, w3_ref[...], preferred_element_type=jnp.float32)
    out = jnp.maximum(y3 + b3_ref[...] + x_f32, 0.0)   # identity path (Cin==Cout)
    o_ref[...] = out.reshape(nb, H, W, Cout).astype(o_ref.dtype)


# --------------------------------------------------------------------------
# Block-size selection from a per-generation VMEM byte budget.
# --------------------------------------------------------------------------
def _vmem_capacity_bytes():
    # v7x has the smallest per-core VMEM (64 MiB) -> conservative default.
    try:
        return int(pltpu.get_tpu_info().vmem_capacity_bytes)
    except Exception:
        return 64 * 1024 * 1024


def _step_vmem_bytes(nb, H, W, Cin, Cmid, Cout):
    M = nb * H * W
    io_blocks = 2 * (M * Cin * 2) + 2 * (M * Cout * 2)   # double-buffered bf16 blocks
    scratch = nb * (H + 2) * W * Cmid * 2                # bf16 padded y1
    weights = (2 * 2 * (Cin * Cmid + 9 * Cmid * Cmid + Cmid * Cout)
               + 2 * 4 * (2 * Cmid + Cout))
    temps = 4 * M * (Cin + Cout + 8 * Cmid)              # rough f32 live intermediates
    return io_blocks + scratch + weights + temps


def _choose_images_per_step(N, H, W, Cin, Cmid, Cout, budget_bytes):
    divisors = [d for d in range(1, N + 1) if N % d == 0]
    fitting = [d for d in divisors
               if _step_vmem_bytes(d, H, W, Cin, Cmid, Cout) <= budget_bytes]
    nb = max(fitting) if fitting else 1
    # Prefer >=2 grid steps (feeds both TensorCores on megacore chips) as long
    # as each step keeps a reasonably large matmul M dimension.
    if N // nb < 2 and N >= 2:
        smaller = [d for d in fitting if N // d >= 2 and d * H * W >= 1024]
        if smaller:
            nb = max(smaller)
    return nb


# --------------------------------------------------------------------------
# Wrapper (NHWC-native, bf16 activations at the HBM boundary).
# --------------------------------------------------------------------------
def bottleneck_block_nhwc(x_nhwc, folded_params):
    w1, b1, w2, b2, w3, b3 = folded_params
    N, H, W, Cin = x_nhwc.shape
    Cmid = w1.shape[1]
    Cout = w3.shape[1]
    assert Cin == Cout, "identity_downsample=None requires in_channels == out_channels"
    assert H >= 2 and W >= 2

    cap = _vmem_capacity_bytes()
    vmem_limit = min(int(cap * 0.8), 110 * 1024 * 1024)
    budget = int(vmem_limit * 0.75)
    nb = _choose_images_per_step(N, H, W, Cin, Cmid, Cout, budget)
    need = _step_vmem_bytes(nb, H, W, Cin, Cmid, Cout)
    if need > budget:   # best effort for very large feature maps (see TODO)
        vmem_limit = max(vmem_limit, min(int(need * 1.25), int(cap * 0.9)))
    grid_n = N // nb

    itemsize = jnp.dtype(x_nhwc.dtype).itemsize
    flops = 2 * N * H * W * (Cin * Cmid + 9 * Cmid * Cmid + Cmid * Cout)
    bytes_accessed = (N * H * W * (Cin + Cout) * itemsize
                      + (Cin * Cmid + 9 * Cmid * Cmid + Cmid * Cout) * 2
                      + (2 * Cmid + Cout) * 4)

    return pl.pallas_call(
        _bottleneck_kernel,
        out_shape=jax.ShapeDtypeStruct((N, H, W, Cout), x_nhwc.dtype),
        grid_spec=pltpu.PrefetchScalarGridSpec(
            num_scalar_prefetch=0,
            grid=(grid_n,),
            in_specs=[
                pl.BlockSpec((nb, H, W, Cin), lambda n: (n, 0, 0, 0)),
                pl.BlockSpec((Cin, Cmid), lambda n: (0, 0)),
                pl.BlockSpec((1, Cmid), lambda n: (0, 0)),
                pl.BlockSpec((3, Cmid, 3 * Cmid), lambda n: (0, 0, 0)),
                pl.BlockSpec((1, Cmid), lambda n: (0, 0)),
                pl.BlockSpec((Cmid, Cout), lambda n: (0, 0)),
                pl.BlockSpec((1, Cout), lambda n: (0, 0)),
            ],
            out_specs=pl.BlockSpec((nb, H, W, Cout), lambda n: (n, 0, 0, 0)),
            scratch_shapes=[pltpu.VMEM((nb, H + 2, W, Cmid), jnp.bfloat16)],
        ),
        compiler_params=pltpu.CompilerParams(
            dimension_semantics=("parallel",),
            vmem_limit_bytes=vmem_limit,
        ),
        cost_estimate=pl.CostEstimate(
            flops=flops, transcendentals=0, bytes_accessed=bytes_accessed),
    )(x_nhwc, w1, b1, w2, b2, w3, b3)


def bottleneck_block(x_nchw, folded_params):
    # NCHW wrapper for parity with the PyTorch module; a full network would
    # stay NHWC/bf16 between blocks and only convert at model entry/exit.
    x = jnp.transpose(x_nchw, (0, 2, 3, 1)).astype(jnp.bfloat16)
    out = bottleneck_block_nhwc(x, folded_params)
    return jnp.transpose(out, (0, 3, 1, 2))


# --------------------------------------------------------------------------
# Deterministic parameter construction (matching the nn.Module's shapes).
# --------------------------------------------------------------------------
def make_raw_params(key, cin, cmid, cout):
    ks = jax.random.split(key, 9)

    def u(k, shape, fan_in):
        bound = 1.0 / math.sqrt(fan_in)
        return jax.random.uniform(k, shape, jnp.float32, -bound, bound)

    def bn_params(k, c):
        k1, k2, k3, k4 = jax.random.split(k, 4)
        gamma = 1.0 + 0.1 * jax.random.normal(k1, (c,), jnp.float32)
        beta = 0.1 * jax.random.normal(k2, (c,), jnp.float32)
        mean = 0.1 * jax.random.normal(k3, (c,), jnp.float32)
        var = jax.random.uniform(k4, (c,), jnp.float32, 0.5, 1.5)
        return gamma, beta, mean, var

    return {
        "w1": u(ks[0], (cmid, cin, 1, 1), cin),          # OIHW
        "b1c": u(ks[1], (cmid,), cin),
        "w2": u(ks[2], (cmid, cmid, 3, 3), cmid * 9),
        "b2c": u(ks[3], (cmid,), cmid * 9),
        "w3": u(ks[4], (cout, cmid, 1, 1), cmid),
        "b3c": u(ks[5], (cout,), cmid),
        "bn1": bn_params(ks[6], cmid),
        "bn2": bn_params(ks[7], cmid),
        "bn3": bn_params(ks[8], cout),
    }


def fold_params(p, eps=1e-5):
    """Fold conv bias + inference-mode BN into the weights (scale) and a
    per-channel shift; weights are cast to bf16 for the MXU.  conv2 weights
    are laid out as (dy, Cin, 3*Cout) so each dy is one lane-dense matmul."""
    def scale_shift(conv_bias, bn):
        gamma, beta, mean, var = bn
        scale = gamma / jnp.sqrt(var + eps)
        shift = beta + scale * (conv_bias - mean)
        return scale, shift

    s1, sh1 = scale_shift(p["b1c"], p["bn1"])
    s2, sh2 = scale_shift(p["b2c"], p["bn2"])
    s3, sh3 = scale_shift(p["b3c"], p["bn3"])

    cmid = p["w1"].shape[0]
    w1 = (p["w1"][:, :, 0, 0].T * s1[None, :]).astype(jnp.bfloat16)     # (Cin, Cmid)
    w2s = p["w2"] * s2[:, None, None, None]                             # OIHW, scaled
    # (O,I,kh,kw) -> (kh, I, kw, O) -> (3, Cmid, 3*Cmid); element
    # [dy, ci, dx*Cmid + co] == W2[co, ci, dy, dx] * scale[co]
    w2 = jnp.transpose(w2s, (2, 1, 3, 0)).reshape(3, cmid, 3 * cmid).astype(jnp.bfloat16)
    w3 = (p["w3"][:, :, 0, 0].T * s3[None, :]).astype(jnp.bfloat16)     # (Cmid, Cout)
    return (w1, sh1.reshape(1, -1), w2, sh2.reshape(1, -1), w3, sh3.reshape(1, -1))


# --------------------------------------------------------------------------
# Pure-JAX references.
# --------------------------------------------------------------------------
def emulate_folded_nhwc(x_nhwc, folded_params):
    """XLA emulation of the exact fused-kernel math (bf16 matmuls, folded BN)."""
    w1, b1, w2f, b2, w3, b3 = folded_params
    N, H, W, Cin = x_nhwc.shape
    Cmid = w1.shape[1]
    M = N * H * W
    x2 = x_nhwc.reshape(M, Cin).astype(jnp.bfloat16)
    xf = x_nhwc.reshape(M, Cin).astype(jnp.float32)
    y1 = jnp.maximum(jnp.dot(x2, w1, preferred_element_type=jnp.float32) + b1, 0.0)
    y1b = y1.astype(jnp.bfloat16).reshape(N, H, W, Cmid)
    y1p = jnp.pad(y1b, ((0, 0), (1, 1), (1, 1), (0, 0)))
    y2 = jnp.zeros((N, H, W, Cmid), jnp.float32)
    for dy in range(3):
        for dx in range(3):
            tap = y1p[:, dy:dy + H, dx:dx + W, :].reshape(M, Cmid)
            wtap = w2f[dy][:, dx * Cmid:(dx + 1) * Cmid]
            y2 = y2 + jnp.dot(tap, wtap,
                              preferred_element_type=jnp.float32).reshape(N, H, W, Cmid)
    y2 = jnp.maximum(y2 + b2, 0.0)
    y2b = y2.reshape(M, Cmid).astype(jnp.bfloat16)
    y3 = jnp.dot(y2b, w3, preferred_element_type=jnp.float32) + b3
    out = jnp.maximum(y3 + xf, 0.0)
    return out.reshape(N, H, W, -1).astype(x_nhwc.dtype)


def reference_block(x, p, eps=1e-5):
    """f32 NCHW reference mirroring the PyTorch forward."""
    hi = jax.lax.Precision.HIGHEST

    def conv(x, w, b, stride, pad):
        y = jax.lax.conv_general_dilated(
            x, w, window_strides=(stride, stride),
            padding=[(pad, pad), (pad, pad)],
            dimension_numbers=("NCHW", "OIHW", "NCHW"),
            precision=hi)
        return y + b.reshape(1, -1, 1, 1)

    def bn(x, bnp):
        g, bta, m, v = bnp
        return (g.reshape(1, -1, 1, 1) * (x - m.reshape(1, -1, 1, 1))
                / jnp.sqrt(v.reshape(1, -1, 1, 1) + eps)
                + bta.reshape(1, -1, 1, 1))

    identity = x
    y = jax.nn.relu(bn(conv(x, p["w1"], p["b1c"], 1, 0), p["bn1"]))
    y = jax.nn.relu(bn(conv(y, p["w2"], p["b2c"], 1, 1), p["bn2"]))
    y = bn(conv(y, p["w3"], p["b3c"], 1, 0), p["bn3"])
    return jax.nn.relu(y + identity)


if __name__ == "__main__":
    # 128 in/out channels keep the HBM-facing loads/stores lane-dense;
    # spatial/batch dims stay small so the test runs instantly.
    N, Cin, H, W = 2, 128, 8, 8
    Cmid, Cout = 32, 128        # identity_downsample=None => Cout == Cin, stride=1

    key = jax.random.PRNGKey(0)
    kx, kp = jax.random.split(key)
    x_nchw = jax.random.normal(kx, (N, Cin, H, W), jnp.float32)
    # bf16 at the HBM boundary (what a real NHWC/bf16 network would feed in).
    x_nhwc = jnp.transpose(x_nchw, (0, 2, 3, 1)).astype(jnp.bfloat16)

    raw = make_raw_params(kp, Cin, Cmid, Cout)
    folded = fold_params(raw)

    out_nhwc = bottleneck_block_nhwc(x_nhwc, folded)
    out_nhwc = jax.block_until_ready(out_nhwc)
    assert out_nhwc.shape == (N, H, W, Cout), out_nhwc.shape
    assert out_nhwc.dtype == jnp.bfloat16, out_nhwc.dtype

    # Tight check against a bf16-matched pure-JAX emulation of the same math.
    emu = emulate_folded_nhwc(x_nhwc, folded)
    o32 = out_nhwc.astype(jnp.float32)
    e32 = emu.astype(jnp.float32)
    err_emu = float(jnp.max(jnp.abs(o32 - e32)))
    assert jnp.allclose(o32, e32, atol=3e-2, rtol=3e-2), f"emu max_err={err_emu}"

    # Semantic check against the f32 PyTorch-style reference; slack covers
    # bf16 weight/activation quantization on the MXU.
    out_nchw = jnp.transpose(o32, (0, 3, 1, 2))
    ref = reference_block(jnp.transpose(x_nhwc.astype(jnp.float32), (0, 3, 1, 2)), raw)
    err_ref = float(jnp.max(jnp.abs(out_nchw - ref)))
    assert jnp.allclose(out_nchw, ref, atol=2.5e-1, rtol=5e-2), f"ref max_err={err_ref}"

    print("KERNEL_OK")
</pallas_src>

<mosaic_0001>
module attributes {stable_mosaic.version = 11 : i64} {
  func.func @_bottleneck_kernel(%arg0: i32, %arg1: memref<2x8x8x128xbf16, #tpu.memory_space<vmem>>, %arg2: memref<128x32xbf16, #tpu.memory_space<vmem>>, %arg3: memref<1x32xf32, #tpu.memory_space<vmem>>, %arg4: memref<3x32x96xbf16, #tpu.memory_space<vmem>>, %arg5: memref<1x32xf32, #tpu.memory_space<vmem>>, %arg6: memref<32x128xbf16, #tpu.memory_space<vmem>>, %arg7: memref<1x128xf32, #tpu.memory_space<vmem>>, %arg8: memref<2x8x8x128xbf16, #tpu.memory_space<vmem>>, %arg9: memref<2x10x8x32xbf16, #tpu.memory_space<vmem>>) attributes {dimension_semantics = [#tpu.dimension_semantics<parallel>], iteration_bounds = array<i64: 1>, scalar_prefetch = 0 : i64, scratch_operands = 1 : i64, tpu.core_type = #tpu.core_type<tc>, window_params = [{transform_indices = @transform_0, window_bounds = array<i64: 2, 8, 8, 128>}, {pipeline_mode = #tpu.pipeline_mode<synchronous>, transform_indices = @transform_1, window_bounds = array<i64: 128, 32>}, {pipeline_mode = #tpu.pipeline_mode<synchronous>, transform_indices = @transform_2, window_bounds = array<i64: 1, 32>}, {pipeline_mode = #tpu.pipeline_mode<synchronous>, transform_indices = @transform_3, window_bounds = array<i64: 3, 32, 96>}, {pipeline_mode = #tpu.pipeline_mode<synchronous>, transform_indices = @transform_4, window_bounds = array<i64: 1, 32>}, {pipeline_mode = #tpu.pipeline_mode<synchronous>, transform_indices = @transform_5, window_bounds = array<i64: 32, 128>}, {pipeline_mode = #tpu.pipeline_mode<synchronous>, transform_indices = @transform_6, window_bounds = array<i64: 1, 128>}, {transform_indices = @transform_7, window_bounds = array<i64: 2, 8, 8, 128>}]} {
    %c0 = arith.constant 0 : index
    %c0_0 = arith.constant 0 : index
    %c0_1 = arith.constant 0 : index
    %c0_2 = arith.constant 0 : index
    %0 = vector.load %arg1[%c0, %c0_0, %c0_1, %c0_2] : memref<2x8x8x128xbf16, #tpu.memory_space<vmem>>, vector<2x8x8x128xbf16>
    %1 = vector.shape_cast %0 : vector<2x8x8x128xbf16> to vector<128x128xbf16>
    %2 = vector.shape_cast %0 : vector<2x8x8x128xbf16> to vector<128x128xbf16>
    %3 = arith.extf %2 : vector<128x128xbf16> to vector<128x128xf32>
    %c0_3 = arith.constant 0 : index
    %c0_4 = arith.constant 0 : index
    %4 = vector.load %arg2[%c0_3, %c0_4] : memref<128x32xbf16, #tpu.memory_space<vmem>>, vector<128x32xbf16>
    %cst = arith.constant dense<0.000000e+00> : vector<128x32xf32>
    %5 = tpu.matmul %1, %4, %cst {dimension_numbers = #tpu.dot_dimension_numbers<[1], [0], [0], [1], [0, 0, 1, 1], [], []>} : vector<128x128xbf16>, vector<128x32xbf16>, vector<128x32xf32> -> vector<128x32xf32>
    %c0_5 = arith.constant 0 : index
    %c0_6 = arith.constant 0 : index
    %6 = vector.load %arg3[%c0_5, %c0_6] : memref<1x32xf32, #tpu.memory_space<vmem>>, vector<1x32xf32>
    %7 = vector.broadcast %6 : vector<1x32xf32> to vector<128x32xf32>
    %8 = arith.addf %5, %7 : vector<128x32xf32>
    %cst_7 = arith.constant 0.000000e+00 : f32
    %9 = vector.broadcast %cst_7 : f32 to vector<128x32xf32>
    %10 = arith.maximumf %8, %9 : vector<128x32xf32>
    %11 = arith.truncf %10 : vector<128x32xf32> to vector<128x32xbf16>
    %12 = vector.shape_cast %11 : vector<128x32xbf16> to vector<2x8x8x32xbf16>
    %cst_8 = arith.constant 0.000000e+00 : bf16
    %13 = vector.broadcast %cst_8 : bf16 to vector<2x1x8x32xbf16>
    %14 = tpu.concatenate %13, %12, %13 in 1 : vector<2x1x8x32xbf16>, vector<2x8x8x32xbf16>, vector<2x1x8x32xbf16> -> vector<2x10x8x32xbf16>
    %c0_9 = arith.constant 0 : index
    %c0_10 = arith.constant 0 : index
    %c0_11 = arith.constant 0 : index
    %c0_12 = arith.constant 0 : index
    %15 = vector.load %arg9[%c0_9, %c0_10, %c0_11, %c0_12] : memref<2x10x8x32xbf16, #tpu.memory_space<vmem>>, vector<2x10x8x32xbf16>
    tpu.vector_store %arg9[%c0_9, %c0_10, %c0_11, %c0_12], %14 {strides = array<i32>} : memref<2x10x8x32xbf16, #tpu.memory_space<vmem>>, vector<2x10x8x32xbf16>,
    %cst_13 = arith.constant 0.000000e+00 : f32
    %16 = vector.broadcast %cst_13 : f32 to vector<128x96xf32>
    %c0_14 = arith.constant 0 : index
    %c0_15 = arith.constant 0 : index
    %c0_16 = arith.constant 0 : index
    %c0_17 = arith.constant 0 : index
    %17 = vector.load %arg9[%c0_14, %c0_15, %c0_16, %c0_17] : memref<2x10x8x32xbf16, #tpu.memory_space<vmem>>, vector<2x8x8x32xbf16>
    %18 = vector.shape_cast %17 : vector<2x8x8x32xbf16> to vector<128x32xbf16>
    %c0_18 = arith.constant 0 : index
    %c0_19 = arith.constant 0 : index
    %c0_20 = arith.constant 0 : index
    %19 = vector.load %arg4[%c0_18, %c0_19, %c0_20] : memref<3x32x96xbf16, #tpu.memory_space<vmem>>, vector<1x32x96xbf16>
    %20 = vector.shape_cast %19 : vector<1x32x96xbf16> to vector<32x96xbf16>
    %cst_21 = arith.constant dense<0.000000e+00> : vector<128x96xf32>
    %21 = tpu.matmul %18, %20, %cst_21 {dimension_numbers = #tpu.dot_dimension_numbers<[1], [0], [0], [1], [0, 0, 1, 1], [], []>} : vector<128x32xbf16>, vector<32x96xbf16>, vector<128x96xf32> -> vector<128x96xf32>
    %22 = arith.addf %16, %21 : vector<128x96xf32>
    %c0_22 = arith.constant 0 : index
    %c1 = arith.constant 1 : index
    %c0_23 = arith.constant 0 : index
    %c0_24 = arith.constant 0 : index
    %23 = vector.load %arg9[%c0_22, %c1, %c0_23, %c0_24] : memref<2x10x8x32xbf16, #tpu.memory_space<vmem>>, vector<2x8x8x32xbf16>
    %24 = vector.shape_cast %23 : vector<2x8x8x32xbf16> to vector<128x32xbf16>
    %c1_25 = arith.constant 1 : index
    %c0_26 = arith.constant 0 : index
    %c0_27 = arith.constant 0 : index
    %25 = vector.load %arg4[%c1_25, %c0_26, %c0_27] : memref<3x32x96xbf16, #tpu.memory_space<vmem>>, vector<1x32x96xbf16>
    %26 = vector.shape_cast %25 : vector<1x32x96xbf16> to vector<32x96xbf16>
    %cst_28 = arith.constant dense<0.000000e+00> : vector<128x96xf32>
    %27 = tpu.matmul %24, %26, %cst_28 {dimension_numbers = #tpu.dot_dimension_numbers<[1], [0], [0], [1], [0, 0, 1, 1], [], []>} : vector<128x32xbf16>, vector<32x96xbf16>, vector<128x96xf32> -> vector<128x96xf32>
    %28 = arith.addf %22, %27 : vector<128x96xf32>
    %c0_29 = arith.constant 0 : index
    %c2 = arith.constant 2 : index
    %c0_30 = arith.constant 0 : index
    %c0_31 = arith.constant 0 : index
    %29 = vector.load %arg9[%c0_29, %c2, %c0_30, %c0_31] : memref<2x10x8x32xbf16, #tpu.memory_space<vmem>>, vector<2x8x8x32xbf16>
    %30 = vector.shape_cast %29 : vector<2x8x8x32xbf16> to vector<128x32xbf16>
    %c2_32 = arith.constant 2 : index
    %c0_33 = arith.constant 0 : index
    %c0_34 = arith.constant 0 : index
    %31 = vector.load %arg4[%c2_32, %c0_33, %c0_34] : memref<3x32x96xbf16, #tpu.memory_space<vmem>>, vector<1x32x96xbf16>
    %32 = vector.shape_cast %31 : vector<1x32x96xbf16> to vector<32x96xbf16>
    %cst_35 = arith.constant dense<0.000000e+00> : vector<128x96xf32>
    %33 = tpu.matmul %30, %32, %cst_35 {dimension_numbers = #tpu.dot_dimension_numbers<[1], [0], [0], [1], [0, 0, 1, 1], [], []>} : vector<128x32xbf16>, vector<32x96xbf16>, vector<128x96xf32> -> vector<128x96xf32>
    %34 = arith.addf %28, %33 : vector<128x96xf32>
    %35 = vector.extract_strided_slice %34 {offsets = [0, 0], sizes = [128, 32], strides = [1, 1]} : vector<128x96xf32> to vector<128x32xf32>
    %36 = vector.shape_cast %35 : vector<128x32xf32> to vector<2x8x8x32xf32>
    %37 = vector.extract_strided_slice %34 {offsets = [0, 32], sizes = [128, 32], strides = [1, 1]} : vector<128x96xf32> to vector<128x32xf32>
    %38 = vector.shape_cast %37 : vector<128x32xf32> to vector<2x8x8x32xf32>
    %39 = vector.extract_strided_slice %34 {offsets = [0, 64], sizes = [128, 32], strides = [1, 1]} : vector<128x96xf32> to vector<128x32xf32>
    %40 = vector.shape_cast %39 : vector<128x32xf32> to vector<2x8x8x32xf32>
    %cst_36 = arith.constant 0.000000e+00 : f32
    %41 = vector.broadcast %cst_36 : f32 to vector<2x8x1x32xf32>
    %42 = vector.extract_strided_slice %36 {offsets = [0, 0, 0, 0], sizes = [2, 8, 7, 32], strides = [1, 1, 1, 1]} : vector<2x8x8x32xf32> to vector<2x8x7x32xf32>
    %43 = tpu.concatenate %41, %42 in 2 : vector<2x8x1x32xf32>, vector<2x8x7x32xf32> -> vector<2x8x8x32xf32>
    %44 = vector.extract_strided_slice %40 {offsets = [0, 0, 1, 0], sizes = [2, 8, 7, 32], strides = [1, 1, 1, 1]} : vector<2x8x8x32xf32> to vector<2x8x7x32xf32>
    %45 = tpu.concatenate %44, %41 in 2 : vector<2x8x7x32xf32>, vector<2x8x1x32xf32> -> vector<2x8x8x32xf32>
    %46 = arith.addf %38, %43 : vector<2x8x8x32xf32>
    %47 = arith.addf %46, %45 : vector<2x8x8x32xf32>
    %c0_37 = arith.constant 0 : index
    %c0_38 = arith.constant 0 : index
    %48 = vector.load %arg5[%c0_37, %c0_38] : memref<1x32xf32, #tpu.memory_space<vmem>>, vector<1x32xf32>
    %49 = vector.shape_cast %48 : vector<1x32xf32> to vector<1x1x1x32xf32>
    %50 = vector.broadcast %49 : vector<1x1x1x32xf32> to vector<2x8x8x32xf32>
    %51 = arith.addf %47, %50 : vector<2x8x8x32xf32>
    %cst_39 = arith.constant 0.000000e+00 : f32
    %52 = vector.broadcast %cst_39 : f32 to vector<2x8x8x32xf32>
    %53 = arith.maximumf %51, %52 : vector<2x8x8x32xf32>
    %54 = vector.shape_cast %53 : vector<2x8x8x32xf32> to vector<128x32xf32>
    %55 = arith.truncf %54 : vector<128x32xf32> to vector<128x32xbf16>
    %c0_40 = arith.constant 0 : index
    %c0_41 = arith.constant 0 : index
    %56 = vector.load %arg6[%c0_40, %c0_41] : memref<32x128xbf16, #tpu.memory_space<vmem>>, vector<32x128xbf16>
    %cst_42 = arith.constant dense<0.000000e+00> : vector<128x128xf32>
    %57 = tpu.matmul %55, %56, %cst_42 {dimension_numbers = #tpu.dot_dimension_numbers<[1], [0], [0], [1], [0, 0, 1, 1], [], []>} : vector<128x32xbf16>, vector<32x128xbf16>, vector<128x128xf32> -> vector<128x128xf32>
    %c0_43 = arith.constant 0 : index
    %c0_44 = arith.constant 0 : index
    %58 = vector.load %arg7[%c0_43, %c0_44] : memref<1x128xf32, #tpu.memory_space<vmem>>, vector<1x128xf32>
    %59 = vector.broadcast %58 : vector<1x128xf32> to vector<128x128xf32>
    %60 = arith.addf %57, %59 : vector<128x128xf32>
    %61 = arith.addf %60, %3 : vector<128x128xf32>
    %cst_45 = arith.constant 0.000000e+00 : f32
    %62 = vector.broadcast %cst_45 : f32 to vector<128x128xf32>
    %63 = arith.maximumf %61, %62 : vector<128x128xf32>
    %64 = vector.shape_cast %63 : vector<128x128xf32> to vector<2x8x8x128xf32>
    %65 = arith.truncf %64 : vector<2x8x8x128xf32> to vector<2x8x8x128xbf16>
    %c0_46 = arith.constant 0 : index
    %c0_47 = arith.constant 0 : index
    %c0_48 = arith.constant 0 : index
    %c0_49 = arith.constant 0 : index
    %66 = vector.load %arg8[%c0_46, %c0_47, %c0_48, %c0_49] : memref<2x8x8x128xbf16, #tpu.memory_space<vmem>>, vector<2x8x8x128xbf16>
    tpu.vector_store %arg8[%c0_46, %c0_47, %c0_48, %c0_49], %65 {strides = array<i32>} : memref<2x8x8x128xbf16, #tpu.memory_space<vmem>>, vector<2x8x8x128xbf16>,
    return
  }
  func.func @transform_0(%arg0: i32) -> (i32, i32, i32, i32) {
    %c0_i32 = arith.constant 0 : i32
    %c0_i32_0 = arith.constant 0 : i32
    %c0_i32_1 = arith.constant 0 : i32
    %c0_i32_2 = arith.constant 0 : i32
    return %arg0, %c0_i32, %c0_i32_0, %c0_i32_1 : i32, i32, i32, i32
  }
  func.func @transform_1(%arg0: i32) -> (i32, i32) {
    %c0_i32 = arith.constant 0 : i32
    %c0_i32_0 = arith.constant 0 : i32
    %c0_i32_1 = arith.constant 0 : i32
    return %c0_i32, %c0_i32_0 : i32, i32
  }
  func.func @transform_2(%arg0: i32) -> (i32, i32) {
    %c0_i32 = arith.constant 0 : i32
    %c0_i32_0 = arith.constant 0 : i32
    %c0_i32_1 = arith.constant 0 : i32
    return %c0_i32, %c0_i32_0 : i32, i32
  }
  func.func @transform_3(%arg0: i32) -> (i32, i32, i32) {
    %c0_i32 = arith.constant 0 : i32
    %c0_i32_0 = arith.constant 0 : i32
    %c0_i32_1 = arith.constant 0 : i32
    %c0_i32_2 = arith.constant 0 : i32
    return %c0_i32, %c0_i32_0, %c0_i32_1 : i32, i32, i32
  }
  func.func @transform_4(%arg0: i32) -> (i32, i32) {
    %c0_i32 = arith.constant 0 : i32
    %c0_i32_0 = arith.constant 0 : i32
    %c0_i32_1 = arith.constant 0 : i32
    return %c0_i32, %c0_i32_0 : i32, i32
  }
  func.func @transform_5(%arg0: i32) -> (i32, i32) {
    %c0_i32 = arith.constant 0 : i32
    %c0_i32_0 = arith.constant 0 : i32
    %c0_i32_1 = arith.constant 0 : i32
    return %c0_i32, %c0_i32_0 : i32, i32
  }
  func.func @transform_6(%arg0: i32) -> (i32, i32) {
    %c0_i32 = arith.constant 0 : i32
    %c0_i32_0 = arith.constant 0 : i32
    %c0_i32_1 = arith.constant 0 : i32
    return %c0_i32, %c0_i32_0 : i32, i32
  }
  func.func @transform_7(%arg0: i32) -> (i32, i32, i32, i32) {
    %c0_i32 = arith.constant 0 : i32
    %c0_i32_0 = arith.constant 0 : i32
    %c0_i32_1 = arith.constant 0 : i32
    %c0_i32_2 = arith.constant 0 : i32
    return %arg0, %c0_i32, %c0_i32_0, %c0_i32_1 : i32, i32, i32, i32
  }
}

</mosaic_0001>

<bundles_post_ra>
// kernel: tpu_custom_call.1
= control target key start
LH: loop header
LB: loop body
LE: loop exit
PB: predicated region body
PF: predicated region fallthrough
CT: control target
= control target key end

     0   :  { %12 = vsyncpa [#allocation4], 0  ;;  %s2447_s0 = inlined_call_operand.vmem [shape: bf16[2,8,8,128], index: 0, kind: input, shape index: {}]   ;;  %s2448_s1 = inlined_call_operand.vmem [shape: bf16[128,32], index: 1, kind: input, shape index: {}]   ;;  %s2449_s2 = inlined_call_operand.vmem [shape: f32[1,32], index: 2, kind: input, shape index: {}]   ;;  %s2450_s3 = inlined_call_operand.hbm [shape: bf16[3,32,96], index: 3, kind: input, shape index: {}]   ;;  %s2451_s4 = inlined_call_operand.vmem [shape: f32[1,32], index: 4, kind: input, shape index: {}]   ;;  %s2452_s5 = inlined_call_operand.vmem [shape: bf16[32,128], index: 5, kind: input, shape index: {}]   ;;  %s2453_s6 = inlined_call_operand.vmem [shape: f32[1,128], index: 6, kind: input, shape index: {}]   ;;  %s2454_s7 = inlined_call_operand.hbm [shape: bf16[2,8,8,128], index: 7, kind: output, shape index: {}]  }
   0x1   :  { %13 = vsyncpa [#allocation5], 0  ;;  %s2008_s24 = smov [#allocation3]  }
   0x2   :  { %s25_s25 = sshll.u32 %s2008_s24, 4  ;;  %s26_s25 = int_to_ptr.vmem [resolvable:$true] %s25_s25 }
   0x3   :  { %s1972_s26 = scalar_lea.vmem %s26_s25, 768  ;;  %p1977_p1 = scmp.lt.s32.totalorder %s26_s25, %s26_s25 }
   0x4   :  { %p1973_p0 = scmp.ne.s32.totalorder %s26_s25, %s1972_s26  ;;  %p1978_p2 = scmp.lt.s32.totalorder %s1972_s26, %s1972_s26 }
   0x6   :  { %p1979_p3 = por %p1978_p2, %p1977_p1 }
   0x8   :  { %p1980_p4 = pnand %p1979_p3, %p1973_p0 }
   0xa   :  { %1983 = shalt.err (!%p1980_p4)
}
   0xb   :  { %s2009_s27 = smov 64   ;;  %s2010_s28 = smov 4  }
   0xc   :  { %31 = dma.hbm_to_vmem [thread:$0]  %s2450_s3, 768, %s26_s25, [#allocation4], %s2009_s27, %s2009_s27, %s2010_s28  }
   0xd   :  { %2004 = dma.done.wait [#allocation4], 768  }
   0xe   :  { %2005 = vsyncadd [#allocation4], 4294966528  ;;  %v1900_v0 = vld [vmem:[%s2448_s1 + $0x38] sm:$0xff]   ;;  %v1901_v1 = vld [vmem:[%s2448_s1 + $0x30] sm:$0xff]   ;;  %vm370_vm0 = vcmask 257024   ;;  %v2011_v16 = vmov 0  }
   0xf   :  { %1781 = vmatprep.subr.bf16.mxu0 %v1900_v0  ;;  %v1902_v2 = vld [vmem:[%s2448_s1 + $0x28] sm:$0xff]   ;;  %v1903_v3 = vld [vmem:[%s2448_s1 + $0x20] sm:$0xff]   ;;  %v1904_v5 = vld [vmem:[%s2448_s1 + $0x18] sm:$0xff]   ;;  %380 = vst.msk [vmem:[#allocation2 + $0x24] sm:$0xf] %vm370_vm0, %v2011_v16  ;;  %vm485_vm1 = vcmask 261120  }
  0x10   :  { %1782 = vmatpush3.bf16.msra.mxu0 %v1900_v0  ;;  %v42_v4 = vld [vmem:[%s2447_s0] sm:$0xff]   ;;  %v1905_v6 = vld [vmem:[%s2448_s1 + $0x10] sm:$0xff]   ;;  %v1906_v7 = vld [vmem:[%s2448_s1 + $0x8] sm:$0xff]   ;;  %371 = vst.msk [vmem:[#allocation2] sm:$0xf] %vm370_vm0, %v2011_v16  ;;  %s2012_s19 = smov 32  }
  0x11   :  { %1783 = vmatprep.subr.bf16.mxu0 %v1901_v1  ;;  %1797 = vmatprep.mubr.bf16.mxu0 %v42_v4  ;;  %v1907_v8 = vld [vmem:[%s2448_s1] sm:$0xff]   ;;  %v44_v9 = vld [vmem:[%s2447_s0 + $0x8] sm:$0xff]   ;;  %v46_v10 = vld [vmem:[%s2447_s0 + $0x10] sm:$0xff]   ;;  %381 = vst.msk [vmem:[#allocation2 + $0x28] sm:$0xf] %vm370_vm0, %v2011_v16  ;;  %vm1088_vm2 = vcmask 1046528  }
  0x12   :  { %v48_v11 = vld [vmem:[%s2447_s0 + $0x18] sm:$0xff]   ;;  %v50_v12 = vld [vmem:[%s2447_s0 + $0x20] sm:$0xff]   ;;  %v52_v13 = vld [vmem:[%s2447_s0 + $0x28] sm:$0xff]   ;;  %390 = vst.msk [vmem:[#allocation2 + $0x4c] sm:$0xf] %vm370_vm0, %v2011_v16  ;;  %vm1039_vm3 = vcmask 1040384  }
  0x13   :  { %v54_v14 = vld [vmem:[%s2447_s0 + $0x30] sm:$0xff]   ;;  %v56_v15 = vld [vmem:[%s2447_s0 + $0x38] sm:$0xff]   ;;  %v1916_v17 = vld [vmem:[#allocation3 + $0x18] sm:$0xff]   ;;  %s2014_s17 = smov [#allocation6]  }
  0x14   :  { %1784 = vmatpush3.bf16.msra.mxu0 %v1901_v1  ;;  %1813 = vmatprep.subr.bf16.mxu1 %v1916_v17  ;;  %v1918_v18 = vld [vmem:[#allocation3 + $0x28] sm:$0xff]   ;;  %v1917_v19 = vld [vmem:[#allocation3 + $0x10] sm:$0xff]   ;;  %v1921_v20 = vld [vmem:[#allocation3 + $0x20] sm:$0xff]  }
  0x15   :  { %1785 = vmatprep.subr.bf16.mxu0 %v1902_v2  ;;  %1814 = vmatpush3.bf16.msra.mxu1 %v1916_v17  ;;  %v2113_v21 = vld [vmem:[#allocation3 + $0x8] sm:$0xff]   ;;  %v2119_v22 = vld [vmem:[%s2449_s2] ss:$0 sm:$0xff]  ;;  %v1930_v60 = vld [vmem:[#allocation3] sm:$0xff]   ;;  %s1551_s2 = sshll.u32 %s2014_s17, 4  ;;  %s1552_s2 = int_to_ptr.vmem [resolvable:$true] %s1551_s2 }
  0x16   :  { %1815 = vmatprep.subr.bf16.mxu1 %v1917_v19  ;;  %p1989_p6 = scmp.lt.s32.totalorder %s1552_s2, %s1552_s2 }
  0x18   :  { %1786 = vmatpush3.bf16.msra.mxu0 %v1902_v2 }
  0x19   :  { %1787 = vmatprep.subr.bf16.mxu0 %v1903_v3  ;;  %1816 = vmatpush3.bf16.msra.mxu1 %v1917_v19 }
  0x1a   :  { %1833 = vmatprep.subr.bf16.mxu1 %v2113_v21 }
  0x1c   :  { %1788 = vmatpush3.bf16.msra.mxu0 %v1903_v3 }
  0x1d   :  { %1789 = vmatprep.subr.bf16.mxu0 %v1904_v5 }
  0x20   :  { %1790 = vmatpush3.bf16.msra.mxu0 %v1904_v5 }
  0x21   :  { %1791 = vmatprep.subr.bf16.mxu0 %v1905_v6 }
  0x24   :  { %1792 = vmatpush3.bf16.msra.mxu0 %v1905_v6 }
  0x25   :  { %1793 = vmatprep.subr.bf16.mxu0 %v1906_v7 }
  0x28   :  { %1794 = vmatpush3.bf16.msra.mxu0 %v1906_v7 }
  0x29   :  { %1795 = vmatprep.subr.bf16.mxu0 %v1907_v8 }
  0x2c   :  { %1796 = vmatpush3.bf16.msra.mxu0 %v1907_v8 }
  0x2d   :  { %1853 = vmatprep.subr.bf16.mxu0 %v1918_v18 }
  0x2f   :  { %1798 = vmatmul.mubr.bf16.vlgmr.msra.gmra.mxu0 %v44_v9 }
  0x30   :  { %1801 = vmatprep.mubr.bf16.mxu0 %v46_v10  ;;  %1854 = vmatpush3.bf16.msra.mxu0 %v1918_v18 }
  0x31   :  { %1855 = vmatprep.subr.bf16.mxu0 %v1921_v20 }
  0x34   :  { %1856 = vmatpush3.bf16.msra.mxu0 %v1921_v20 }
  0x37   :  { %1802 = vmatmul.mubr.bf16.gmra.mxu0 %v48_v11 }
  0x38   :  { %1805 = vmatprep.mubr.bf16.mxu0 %v50_v12 }
  0x3f   :  { %1806 = vmatmul.mubr.bf16.gmra.mxu0 %v52_v13 }
  0x40   :  { %1809 = vmatprep.mubr.bf16.mxu0 %v54_v14 }
  0x47   :  { %1810 = vmatmul.mubr.bf16.gmra.mxu0 %v56_v15 }
  0xef   :  { %v1799_v23 = vpop.f32.mrf.mxu0 }
  0xf0   :  { %v236_v24 = vadd.f32 %v1799_v23, %v2119_v22 }
  0xf1   :  { %v227_v25 = vpop.f32.mrf.mxu0 }
  0xf2   :  { %v292_v26 = vmax.f32 %v236_v24, 0.0  ;;  %v228_v27 = vadd.f32 %v2119_v22, %v227_v25 }
  0xf3   :  { %v1800_v28 = vpop.f32.mrf.mxu0 }
  0xf4   :  { %v1664_v29 = vpack.c.bf16 %v292_v26, %v292_v26  ;;  %v290_v30 = vmax.f32 %v228_v27, 0.0  ;;  %v239_v31 = vadd.f32 %v1800_v28, %v2119_v22 }
  0xf5   :  { %v230_v32 = vpop.f32.mrf.mxu0 }
  0xf6   :  { %374 = vst.msk [vmem:[#allocation2 + $0xc] sm:$0xf] %vm370_vm0, %v1664_v29  ;;  %v1662_v33 = vpack.c.bf16 %v290_v30, %v290_v30  ;;  %v293_v34 = vmax.f32 %v239_v31, 0.0  ;;  %v231_v35 = vadd.f32 %v2119_v22, %v230_v32 }
  0xf7   :  { %v1803_v36 = vpop.f32.mrf.mxu0 }
  0xf8   :  { %372 = vst.msk [vmem:[#allocation2 + $0x4] sm:$0xf] %vm370_vm0, %v1662_v33  ;;  %v1665_v37 = vpack.c.bf16 %v293_v34, %v293_v34  ;;  %v291_v38 = vmax.f32 %v231_v35, 0.0  ;;  %v252_v39 = vadd.f32 %v1803_v36, %v2119_v22 }
  0xf9   :  { %v243_v40 = vpop.f32.mrf.mxu0 }
  0xfa   :  { %375 = vst.msk [vmem:[#allocation2 + $0x10] sm:$0xf] %vm370_vm0, %v1665_v37  ;;  %v1663_v41 = vpack.c.bf16 %v291_v38, %v291_v38  ;;  %v296_v42 = vmax.f32 %v252_v39, 0.0  ;;  %v244_v43 = vadd.f32 %v2119_v22, %v243_v40 }
  0xfb   :  { %v1804_v44 = vpop.f32.mrf.mxu0 }
  0xfc   :  { %373 = vst.msk [vmem:[#allocation2 + $0x8] sm:$0xf] %vm370_vm0, %v1663_v41  ;;  %v1668_v45 = vpack.c.bf16 %v296_v42, %v296_v42  ;;  %v294_v46 = vmax.f32 %v244_v43, 0.0  ;;  %v255_v47 = vadd.f32 %v1804_v44, %v2119_v22 }
  0xfd   :  { %v246_v48 = vpop.f32.mrf.mxu0 }
  0xfe   :  { %378 = vst.msk [vmem:[#allocation2 + $0x1c] sm:$0xf] %vm370_vm0, %v1668_v45  ;;  %v1666_v49 = vpack.c.bf16 %v294_v46, %v294_v46  ;;  %v297_v50 = vmax.f32 %v255_v47, 0.0  ;;  %v247_v51 = vadd.f32 %v2119_v22, %v246_v48  ;;  %v1650_v48 = vld [vmem:[%s2451_s4] ss:$0 sm:$0xff]  ;;  %s2013_s4 = smov 96  }
  0xff   :  { %v1807_v52 = vpop.f32.mrf.mxu0  ;;  %v1937_v39 = vld [vmem:[#allocation2] sm:$0xff]   ;;  %1271 = vrot.lane.b32.xlu0 %v1650_v48, %s2012_s19 }
 0x100   :  { %376 = vst.msk [vmem:[#allocation2 + $0x14] sm:$0xf] %vm370_vm0, %v1666_v49  ;;  %v1669_v53 = vpack.c.bf16 %v297_v50, %v297_v50  ;;  %v295_v54 = vmax.f32 %v247_v51, 0.0  ;;  %v268_v55 = vadd.f32 %v1807_v52, %v2119_v22 }
 0x101   :  { %v259_v56 = vpop.f32.mrf.mxu0  ;;  %v1923_v3 = vld [vmem:[#allocation2 + $0xc] sm:$0xff]  }
 0x102   :  { %379 = vst.msk [vmem:[#allocation2 + $0x20] sm:$0xf] %vm370_vm0, %v1669_v53  ;;  %v1667_v57 = vpack.c.bf16 %v295_v54, %v295_v54  ;;  %v300_v58 = vmax.f32 %v268_v55, 0.0  ;;  %v260_v59 = vadd.f32 %v2119_v22, %v259_v56 }
 0x103   :  { %v1808_v61 = vpop.f32.mrf.mxu0  ;;  %v1919_v62 = vld [vmem:[#allocation2 + $0x4] sm:$0xff]  }
 0x104   :  { %377 = vst.msk [vmem:[#allocation2 + $0x18] sm:$0xf] %vm370_vm0, %v1667_v57  ;;  %v1672_v63 = vpack.c.bf16 %v300_v58, %v300_v58  ;;  %v298_v0 = vmax.f32 %v260_v59, 0.0  ;;  %v271_v1 = vadd.f32 %v1808_v61, %v2119_v22  ;;  %v1922_v2 = vld [vmem:[#allocation2 + $0x8] sm:$0xff]   ;;  %1817 = vmatprep.mubr.msk.bf16.mxu1 %vm485_vm1, %v1919_v62 }
 0x105   :  { %v262_v4 = vpop.f32.mrf.mxu0  ;;  %1857 = vmatprep.mubr.msk.bf16.mxu0 %vm485_vm1, %v1922_v2  ;;  %1818 = vmatmul.mubr.msk.bf16.vlgmr.msra.gmra.mxu1 %vm485_vm1, %v1923_v3  ;;  %v1939_v41 = vld [vmem:[#allocation2 + $0x8] sm:$0xff]  }
 0x106   :  { %384 = vst.msk [vmem:[#allocation2 + $0x34] sm:$0xf] %vm370_vm0, %v1672_v63  ;;  %v1670_v5 = vpack.c.bf16 %v298_v0, %v298_v0  ;;  %v301_v6 = vmax.f32 %v271_v1, 0.0  ;;  %v263_v7 = vadd.f32 %v2119_v22, %v262_v4  ;;  %1834 = vmatpush3.bf16.msra.mxu1 %v2113_v21 }
 0x107   :  { %v1811_v8 = vpop.f32.mrf.mxu0  ;;  %v1924_v9 = vld [vmem:[#allocation2 + $0x10] sm:$0xff]   ;;  %1835 = vmatprep.subr.bf16.mxu1 %v1930_v60 }
 0x108   :  { %382 = vst.msk [vmem:[#allocation2 + $0x2c] sm:$0xf] %vm370_vm0, %v1670_v5  ;;  %v1673_v10 = vpack.c.bf16 %v301_v6, %v301_v6  ;;  %v299_v11 = vmax.f32 %v263_v7, 0.0  ;;  %v284_v12 = vadd.f32 %v1811_v8, %v2119_v22  ;;  %1858 = vmatmul.mubr.msk.bf16.vlgmr.msra.gmra.mxu0 %vm485_vm1, %v1924_v9  ;;  %v1940_v42 = vld [vmem:[#allocation2 + $0x10] sm:$0xff]  }
 0x109   :  { %v275_v13 = vpop.f32.mrf.mxu0  ;;  %v1927_v24 = vld [vmem:[#allocation2 + $0x1c] sm:$0xff]  }
 0x10a   :  { %385 = vst.msk [vmem:[#allocation2 + $0x38] sm:$0xf] %vm370_vm0, %v1673_v10  ;;  %v1671_v14 = vpack.c.bf16 %v299_v11, %v299_v11  ;;  %v304_v15 = vmax.f32 %v284_v12, 0.0  ;;  %v276_v16 = vadd.f32 %v2119_v22, %v275_v13  ;;  %1836 = vmatpush3.bf16.msra.mxu1 %v1930_v60  ;;  %v1928_v29 = vld [vmem:[#allocation2 + $0x20] sm:$0xff]  }
 0x10b   :  { %v1812_v17 = vpop.f32.mrf.mxu0  ;;  %v1925_v18 = vld [vmem:[#allocation2 + $0x14] sm:$0xff]  }
 0x10c   :  { %383 = vst.msk [vmem:[#allocation2 + $0x30] sm:$0xf] %vm370_vm0, %v1671_v14  ;;  %v1676_v19 = vpack.c.bf16 %v304_v15, %v304_v15  ;;  %v302_v20 = vmax.f32 %v276_v16, 0.0  ;;  %v287_v21 = vadd.f32 %v1812_v17, %v2119_v22  ;;  %v1926_v23 = vld [vmem:[#allocation2 + $0x18] sm:$0xff]   ;;  %1821 = vmatprep.mubr.msk.bf16.mxu1 %vm485_vm1, %v1925_v18 }
 0x10d   :  { %v278_v25 = vpop.f32.mrf.mxu0  ;;  %1861 = vmatprep.mubr.msk.bf16.mxu0 %vm485_vm1, %v1926_v23  ;;  %1822 = vmatmul.mubr.msk.bf16.gmra.mxu1 %vm485_vm1, %v1927_v24  ;;  %v1941_v43 = vld [vmem:[#allocation2 + $0x18] sm:$0xff]  }
 0x10e   :  { %388 = vst.msk [vmem:[#allocation2 + $0x44] sm:$0xf] %vm370_vm0, %v1676_v19  ;;  %v1674_v26 = vpack.c.bf16 %v302_v20, %v302_v20  ;;  %v305_v27 = vmax.f32 %v287_v21, 0.0  ;;  %v279_v28 = vadd.f32 %v2119_v22, %v278_v25 }
 0x10f   :  { %v1942_v44 = vld [vmem:[#allocation2 + $0x28] sm:$0xff]  }
 0x110   :  { %386 = vst.msk [vmem:[#allocation2 + $0x3c] sm:$0xf] %vm370_vm0, %v1674_v26  ;;  %v1677_v30 = vpack.c.bf16 %v305_v27, %v305_v27  ;;  %v303_v31 = vmax.f32 %v279_v28, 0.0  ;;  %1862 = vmatmul.mubr.msk.bf16.gmra.mxu0 %vm485_vm1, %v1928_v29 }
 0x111   :  { %v1932_v35 = vld [vmem:[#allocation2 + $0x34] sm:$0xff]  }
 0x112   :  { %389 = vst.msk [vmem:[#allocation2 + $0x48] sm:$0xf] %vm370_vm0, %v1677_v30  ;;  %v1675_v32 = vpack.c.bf16 %v303_v31, %v303_v31 }
 0x113   :  { %v1929_v33 = vld [vmem:[#allocation2 + $0x2c] sm:$0xff]  }
 0x114   :  { %387 = vst.msk [vmem:[#allocation2 + $0x40] sm:$0xf] %vm370_vm0, %v1675_v32  ;;  %v1931_v34 = vld [vmem:[#allocation2 + $0x30] sm:$0xff]   ;;  %1825 = vmatprep.mubr.msk.bf16.mxu1 %vm485_vm1, %v1929_v33 }
 0x115   :  { %1865 = vmatprep.mubr.msk.bf16.mxu0 %vm485_vm1, %v1931_v34  ;;  %1826 = vmatmul.mubr.msk.bf16.gmra.mxu1 %vm485_vm1, %v1932_v35  ;;  %v1943_v45 = vld [vmem:[#allocation2 + $0x30] sm:$0xff]  }
 0x117   :  { %v1933_v22 = vld [vmem:[#allocation2 + $0x38] sm:$0xff]  }
 0x118   :  { %1866 = vmatmul.mubr.msk.bf16.gmra.mxu0 %vm485_vm1, %v1933_v22  ;;  %v1944_v46 = vld [vmem:[#allocation2 + $0x38] sm:$0xff]  }
 0x119   :  { %v1936_v38 = vld [vmem:[#allocation2 + $0x44] sm:$0xff]  }
 0x11a   :  { %v1938_v40 = vld [vmem:[#allocation2 + $0x48] sm:$0xff]  }
 0x11b   :  { %v1934_v36 = vld [vmem:[#allocation2 + $0x3c] sm:$0xff]  }
 0x11c   :  { %v1935_v37 = vld [vmem:[#allocation2 + $0x40] sm:$0xff]   ;;  %1829 = vmatprep.mubr.msk.bf16.mxu1 %vm485_vm1, %v1934_v36 }
 0x11d   :  { %1869 = vmatprep.mubr.msk.bf16.mxu0 %vm485_vm1, %v1935_v37  ;;  %1830 = vmatmul.mubr.msk.bf16.gmra.mxu1 %vm485_vm1, %v1936_v38  ;;  %v1945_v47 = vld [vmem:[#allocation2 + $0x40] sm:$0xff]  }
 0x11e   :  { %1837 = vmatprep.mubr.msk.bf16.mxu1 %vm485_vm1, %v1937_v39 }
 0x120   :  { %1870 = vmatmul.mubr.msk.bf16.gmra.mxu0 %vm485_vm1, %v1938_v40 }
 0x125   :  { %1838 = vmatmul.mubr.msk.bf16.vlgmr.msra.gmra.mxu1 %vm485_vm1, %v1939_v41 }
 0x126   :  { %1841 = vmatprep.mubr.msk.bf16.mxu1 %vm485_vm1, %v1940_v42 }
 0x12d   :  { %1842 = vmatmul.mubr.msk.bf16.gmra.mxu1 %vm485_vm1, %v1941_v43 }
 0x12e   :  { %1845 = vmatprep.mubr.msk.bf16.mxu1 %vm485_vm1, %v1942_v44 }
 0x135   :  { %1846 = vmatmul.mubr.msk.bf16.gmra.mxu1 %vm485_vm1, %v1943_v45 }
 0x136   :  { %1849 = vmatprep.mubr.msk.bf16.mxu1 %vm485_vm1, %v1944_v46 }
 0x13d   :  { %1850 = vmatmul.mubr.msk.bf16.gmra.mxu1 %vm485_vm1, %v1945_v47 }
 0x1c5   :  { %v1819_v49 = vpop.f32.mrf.mxu1 }
 0x1c7   :  { %v544_v50 = vpop.f32.mrf.mxu1 }
 0x1c8   :  { %v1859_v60 = vpop.f32.mrf.mxu0 }
 0x1c9   :  { %v1820_v51 = vpop.f32.mrf.mxu1 }
 0x1ca   :  { %v912_v63 = vpop.f32.mrf.mxu0 }
 0x1cb   :  { %v547_v52 = vpop.f32.mrf.mxu1 }
 0x1cc   :  { %v1860_v2 = vpop.f32.mrf.mxu0 }
 0x1cd   :  { %v1823_v53 = vpop.f32.mrf.mxu1 }
 0x1ce   :  { %v915_v6 = vpop.f32.mrf.mxu0 }
 0x1cf   :  { %v2182_v54 = vpop.f32.mrf.mxu1 }
 0x1d0   :  { %v1863_v15 = vpop.f32.mrf.mxu0 }
 0x1d1   :  { %v1824_v55 = vpop.f32.mrf.mxu1 }
 0x1d2   :  { %v928_v25 = vpop.f32.mrf.mxu0 }
 0x1d3   :  { %v2184_v56 = vpop.f32.mrf.mxu1 }
 0x1d4   :  { %v1864_v35 = vpop.f32.mrf.mxu0 }
 0x1d5   :  { %v2186_v57 = vpop.f32.mrf.mxu1 }
 0x1d6   :  { %v931_v43 = vpop.f32.mrf.mxu0 }
 0x1d7   :  { %v2188_v58 = vpop.f32.mrf.mxu1 }
 0x1d9   :  { %v2190_v59 = vpop.f32.mrf.mxu1 }
 0x1db   :  { %v2192_v61 = vpop.f32.mrf.mxu1 }
 0x1dd   :  { %v2194_v62 = vpop.f32.mrf.mxu1 }
 0x1df   :  { %v2196_v0 = vpop.f32.mrf.mxu1 }
 0x1e1   :  { %v2198_v1 = vpop.f32.mrf.mxu1 }
 0x1e3   :  { %v2200_v3 = vpop.f32.mrf.mxu1 }
 0x1e5   :  { %v1839_v4 = vpop.f32.mrf.mxu1 }
 0x1e6   :  { %v726_v5 = vadd.f32 %v1839_v4, %v1819_v49 }
 0x1e7   :  { %v717_v7 = vpop.f32.mrf.mxu1 }
 0x1e8   :  { %v2202_v8 = vadd.f32 %v1859_v60, %v726_v5  ;;  %v718_v9 = vadd.f32 %v717_v7, %v544_v50 }
 0x1e9   :  { %v1840_v10 = vpop.f32.mrf.mxu1 }
 0x1ea   :  { %v2204_v11 = vadd.f32 %v912_v63, %v718_v9  ;;  %v729_v12 = vadd.f32 %v1840_v10, %v1820_v51  ;;  %v1058_v13 = vrot.slane %v2202_v8, 1  ;;  %v1009_v14 = vrot.slane %v2202_v8, 7  ;;  %v1867_v51 = vpop.f32.mrf.mxu0 }
 0x1eb   :  { %v720_v16 = vpop.f32.mrf.mxu1 }
 0x1ec   :  { %v2208_v17 = vadd.f32 %v1860_v2, %v729_v12  ;;  %v721_v18 = vadd.f32 %v720_v16, %v547_v52  ;;  %v1091_v19 = vsel %vm1088_vm2, %v1058_v13, 0.0  ;;  %v1042_v20 = vsel %vm1039_vm3, 0.0, %v1009_v14  ;;  %v944_v2 = vpop.f32.mrf.mxu0 }
 0x1ed   :  { %1205 = vrot.lane.b32.xlu0 %v1091_v19, %s2013_s4  ;;  %1125 = vrot.lane.b32.xlu1 %v1042_v20, %s2012_s19  ;;  %v1843_v21 = vpop.f32.mrf.mxu1  ;;  %v1007_v23 = vrot.slane %v2204_v11, 7  ;;  %v1056_v28 = vrot.slane %v2204_v11, 1 }
 0x1ee   :  { %v1010_v24 = vrot.slane %v2208_v17, 7  ;;  %v742_v26 = vadd.f32 %v1843_v21, %v1823_v53  ;;  %v2217_v29 = vadd.f32 %v915_v6, %v721_v18  ;;  %v1059_v32 = vrot.slane %v2208_v17, 1  ;;  %v1868_v13 = vpop.f32.mrf.mxu0 }
 0x1ef   :  { %v733_v27 = vpop.f32.mrf.mxu1  ;;  %v1040_v31 = vsel %vm1039_vm3, 0.0, %v1007_v23  ;;  %v1089_v37 = vsel %vm1088_vm2, %v1056_v28, 0.0 }
 0x1f0   :  { %v1043_v30 = vsel %vm1039_vm3, 0.0, %v1010_v24  ;;  %v2224_v22 = vadd.f32 %v1863_v15, %v742_v26  ;;  %v1092_v39 = vsel %vm1088_vm2, %v1059_v32, 0.0  ;;  %v1057_v40 = vrot.slane %v2217_v29, 1  ;;  %v947_v20 = vpop.f32.mrf.mxu0 }
 0x1f1   :  { %1127 = vrot.lane.b32.xlu1 %v1043_v30, %s2012_s19  ;;  %v1844_v33 = vpop.f32.mrf.mxu1  ;;  %1121 = vrot.lane.b32.xlu0 %v1040_v31, %s2012_s19  ;;  %v1008_v41 = vrot.slane %v2217_v29, 7  ;;  %v734_v44 = vadd.f32 %v733_v27, %v2182_v54 }
 0x1f2   :  { %v745_v34 = vadd.f32 %v1844_v33, %v1824_v55  ;;  %v1013_v45 = vrot.slane %v2224_v22, 7  ;;  %v1090_v47 = vsel %vm1088_vm2, %v1057_v40, 0.0  ;;  %v1062_v53 = vrot.slane %v2224_v22, 1  ;;  %v1871_v30 = vpop.f32.mrf.mxu0 }
 0x1f3   :  { %v736_v36 = vpop.f32.mrf.mxu1  ;;  %v1041_v48 = vsel %vm1039_vm3, 0.0, %v1008_v41  ;;  %v2242_v52 = vadd.f32 %v928_v25, %v734_v44 }
 0x1f4   :  { %v2227_v38 = vadd.f32 %v1864_v35, %v745_v34  ;;  %v737_v46 = vadd.f32 %v736_v36, %v2184_v56  ;;  %v1046_v55 = vsel %vm1039_vm3, 0.0, %v1013_v45  ;;  %v1095_v4 = vsel %vm1088_vm2, %v1062_v53, 0.0  ;;  %v960_v36 = vpop.f32.mrf.mxu0 }
 0x1f5   :  { %1207 = vrot.lane.b32.xlu1 %v1092_v39, %s2013_s4  ;;  %v1847_v42 = vpop.f32.mrf.mxu1  ;;  %1201 = vrot.lane.b32.xlu0 %v1089_v37, %s2013_s4  ;;  %v1011_v5 = vrot.slane %v2242_v52, 7  ;;  %v1060_v15 = vrot.slane %v2242_v52, 1 }
 0x1f6   :  { %v1014_v49 = vrot.slane %v2227_v38, 7  ;;  %v2245_v54 = vadd.f32 %v931_v43, %v737_v46  ;;  %v1063_v60 = vrot.slane %v2227_v38, 1  ;;  %v758_v6 = vadd.f32 %v1847_v42, %v2186_v57  ;;  %v1872_v45 = vpop.f32.mrf.mxu0 }
 0x1f7   :  { %v749_v50 = vpop.f32.mrf.mxu1  ;;  %v1044_v14 = vsel %vm1039_vm3, 0.0, %v1011_v5  ;;  %v1093_v23 = vsel %vm1088_vm2, %v1060_v15, 0.0 }
 0x1f8   :  { %v1047_v56 = vsel %vm1039_vm3, 0.0, %v1014_v49  ;;  %v1096_v9 = vsel %vm1088_vm2, %v1063_v60, 0.0  ;;  %v1012_v10 = vrot.slane %v2245_v54, 7  ;;  %v2262_v16 = vadd.f32 %v1867_v51, %v758_v6  ;;  %v963_v53 = vpop.f32.mrf.mxu0 }
 0x1f9   :  { %1203 = vrot.lane.b32.xlu1 %v1090_v47, %s2013_s4  ;;  %1123 = vrot.lane.b32.xlu0 %v1041_v48, %s2012_s19  ;;  %v1848_v63 = vpop.f32.mrf.mxu1  ;;  %v750_v21 = vadd.f32 %v749_v50, %v2188_v58 }
 0x1fa   :  { %v761_v7 = vadd.f32 %v1848_v63, %v2190_v59  ;;  %v1045_v57 = vsel %vm1039_vm3, 0.0, %v1012_v10  ;;  %v1061_v59 = vrot.slane %v2245_v54, 1  ;;  %v1017_v26 = vrot.slane %v2262_v16, 7 }
 0x1fb   :  { %v752_v12 = vpop.f32.mrf.mxu1  ;;  %v2278_v31 = vadd.f32 %v944_v2, %v750_v21  ;;  %v1066_v58 = vrot.slane %v2262_v16, 1  ;;  %v2343_v21 = vpop.permute.xlu0 %1271 }
 0x1fc   :  { %v2264_v18 = vadd.f32 %v1868_v13, %v761_v7  ;;  %v753_v24 = vadd.f32 %v752_v12, %v2192_v61  ;;  %v1094_v25 = vsel %vm1088_vm2, %v1061_v59, 0.0  ;;  %v1050_v61 = vsel %vm1039_vm3, 0.0, %v1017_v26  ;;  %v1946_v59 = vld [vmem:[%s2452_s5 + $0x8] sm:$0xff]   ;;  %v1947_v26 = vld [vmem:[%s2452_s5] sm:$0xff]  }
 0x1fd   :  { %1133 = vrot.lane.b32.xlu1 %v1046_v55, %s2012_s19  ;;  %1135 = vrot.lane.b32.xlu0 %v1047_v56, %s2012_s19  ;;  %v1851_v19 = vpop.f32.mrf.mxu1  ;;  %v1015_v39 = vrot.slane %v2278_v31, 7  ;;  %v1099_v41 = vsel %vm1088_vm2, %v1066_v58, 0.0 }
 0x1fe   :  { %v1018_v27 = vrot.slane %v2264_v18, 7  ;;  %v2281_v32 = vadd.f32 %v947_v20, %v753_v24  ;;  %v1067_v34 = vrot.slane %v2264_v18, 1  ;;  %v774_v37 = vadd.f32 %v1851_v19, %v2194_v62  ;;  %1873 = vmatprep.subr.bf16.mxu1 %v1946_v59 }
 0x1ff   :  { %v765_v28 = vpop.f32.mrf.mxu1  ;;  %v1048_v47 = vsel %vm1039_vm3, 0.0, %v1015_v39  ;;  %1874 = vmatpush3.bf16.msra.mxu1 %v1946_v59 }
 0x200   :  { %v1051_v33 = vsel %vm1039_vm3, 0.0, %v1018_v27  ;;  %v1100_v42 = vsel %vm1088_vm2, %v1067_v34, 0.0  ;;  %v1016_v43 = vrot.slane %v2281_v32, 7  ;;  %v2296_v46 = vadd.f32 %v1871_v30, %v774_v37  ;;  %1875 = vmatprep.subr.bf16.mxu1 %v1947_v26 }
 0x201   :  { %1213 = vrot.lane.b32.xlu1 %v1095_v4, %s2013_s4  ;;  %1215 = vrot.lane.b32.xlu0 %v1096_v9, %s2013_s4  ;;  %v1852_v35 = vpop.f32.mrf.mxu1  ;;  %v766_v62 = vadd.f32 %v765_v28, %v2196_v0  ;;  %v1065_v51 = vrot.slane %v2281_v32, 1 }
 0x202   :  { %v777_v40 = vadd.f32 %v1852_v35, %v2198_v1  ;;  %v1064_v1 = vrot.slane %v2278_v31, 1  ;;  %v1049_v50 = vsel %vm1039_vm3, 0.0, %v1016_v43  ;;  %v1021_v63 = vrot.slane %v2296_v46, 7 }
 0x203   :  { %v768_v44 = vpop.f32.mrf.mxu1  ;;  %v2308_v55 = vadd.f32 %v960_v36, %v766_v62  ;;  %v1098_v60 = vsel %vm1088_vm2, %v1065_v51, 0.0  ;;  %v1070_v15 = vrot.slane %v2296_v46, 1  ;;  %1876 = vmatpush3.bf16.msra.mxu1 %v1947_v26 }
 0x204   :  { %v2301_v48 = vadd.f32 %v1872_v45, %v777_v40  ;;  %v769_v49 = vadd.f32 %v768_v44, %v2200_v3  ;;  %v1097_v0 = vsel %vm1088_vm2, %v1064_v1, 0.0  ;;  %v1054_v2 = vsel %vm1039_vm3, 0.0, %v1021_v63 }
 0x205   :  { %1129 = vrot.lane.b32.xlu1 %v1044_v14, %s2012_s19  ;;  %1131 = vrot.lane.b32.xlu0 %v1045_v57, %s2012_s19  ;;  %v1019_v5 = vrot.slane %v2308_v55, 7  ;;  %v1068_v10 = vrot.slane %v2308_v55, 1  ;;  %v1103_v19 = vsel %vm1088_vm2, %v1070_v15, 0.0 }
 0x206   :  { %v2311_v56 = vadd.f32 %v963_v53, %v769_v49  ;;  %v1022_v3 = vrot.slane %v2301_v48, 7  ;;  %v1071_v57 = vrot.slane %v2301_v48, 1 }
 0x207   :  { %v1052_v7 = vsel %vm1039_vm3, 0.0, %v1019_v5  ;;  %v1101_v13 = vsel %vm1088_vm2, %v1068_v10, 0.0 }
 0x208   :  { %v1055_v4 = vsel %vm1039_vm3, 0.0, %v1022_v3  ;;  %v1020_v6 = vrot.slane %v2311_v56, 7  ;;  %v1069_v12 = vrot.slane %v2311_v56, 1  ;;  %v1104_v20 = vsel %vm1088_vm2, %v1071_v57, 0.0 }
 0x209   :  { %1209 = vrot.lane.b32.xlu1 %v1093_v23, %s2013_s4  ;;  %1211 = vrot.lane.b32.xlu0 %v1094_v25, %s2013_s4 }
 0x20a   :  { %v1053_v9 = vsel %vm1039_vm3, 0.0, %v1020_v6  ;;  %v1102_v14 = vsel %vm1088_vm2, %v1069_v12, 0.0 }
 0x20d   :  { %1141 = vrot.lane.b32.xlu1 %v1050_v61, %s2012_s19  ;;  %1143 = vrot.lane.b32.xlu0 %v1051_v33, %s2012_s19 }
 0x211   :  { %1221 = vrot.lane.b32.xlu1 %v1099_v41, %s2013_s4  ;;  %1223 = vrot.lane.b32.xlu0 %v1100_v42, %s2013_s4 }
 0x215   :  { %1137 = vrot.lane.b32.xlu1 %v1048_v47, %s2012_s19  ;;  %1139 = vrot.lane.b32.xlu0 %v1049_v50, %s2012_s19 }
 0x219   :  { %1217 = vrot.lane.b32.xlu1 %v1097_v0, %s2013_s4  ;;  %1219 = vrot.lane.b32.xlu0 %v1098_v60, %s2013_s4 }
 0x21d   :  { %1149 = vrot.lane.b32.xlu1 %v1054_v2, %s2012_s19  ;;  %1151 = vrot.lane.b32.xlu0 %v1055_v4, %s2012_s19 }
 0x221   :  { %1145 = vrot.lane.b32.xlu1 %v1052_v7, %s2012_s19  ;;  %1147 = vrot.lane.b32.xlu0 %v1053_v9, %s2012_s19 }
 0x225   :  { %1225 = vrot.lane.b32.xlu1 %v1101_v13, %s2013_s4  ;;  %1227 = vrot.lane.b32.xlu0 %v1102_v14, %s2013_s4 }
 0x229   :  { %1229 = vrot.lane.b32.xlu1 %v1103_v19, %s2013_s4  ;;  %1231 = vrot.lane.b32.xlu0 %v1104_v20, %s2013_s4 }
 0x25f   :  { %v1206_v23 = vpop.permute.xlu0 %1205  ;;  %v1126_v24 = vpop.permute.xlu1 %1125 }
 0x260   :  { %v1171_v25 = vadd.f32 %v1126_v24, %v2202_v8 }
 0x262   :  { %v1251_v30 = vadd.f32 %v1206_v23, %v1171_v25 }
 0x263   :  { %v1128_v27 = vpop.permute.xlu1 %1127  ;;  %v1122_v28 = vpop.permute.xlu0 %1121 }
 0x264   :  { %v1172_v58 = vadd.f32 %v1128_v27, %v2208_v17  ;;  %v1276_v34 = vadd.f32 %v2343_v21, %v1251_v30  ;;  %v1169_v35 = vadd.f32 %v1122_v28, %v2204_v11 }
 0x266   :  { %v1292_v41 = vmax.f32 %v1276_v34, 0.0 }
 0x267   :  { %v1208_v61 = vpop.permute.xlu1 %1207  ;;  %v1202_v33 = vpop.permute.xlu0 %1201 }
 0x268   :  { %v1252_v36 = vadd.f32 %v1208_v61, %v1172_v58  ;;  %v1249_v37 = vadd.f32 %v1202_v33, %v1169_v35 }
 0x26a   :  { %v1277_v8 = vadd.f32 %v2343_v21, %v1252_v36  ;;  %v1274_v44 = vadd.f32 %v2343_v21, %v1249_v37 }
 0x26b   :  { %v1204_v39 = vpop.permute.xlu1 %1203  ;;  %v1124_v40 = vpop.permute.xlu0 %1123 }
 0x26c   :  { %v1293_v42 = vmax.f32 %v1277_v8, 0.0  ;;  %v1170_v43 = vadd.f32 %v1124_v40, %v2217_v29  ;;  %v1290_v11 = vmax.f32 %v1274_v44, 0.0 }
 0x26e   :  { %v1250_v45 = vadd.f32 %v1204_v39, %v1170_v43  ;;  %v1307_v17 = vpack.c.bf16 %v1293_v42, %v1292_v41 }
 0x26f   :  { %v1134_v62 = vpop.permute.xlu1 %1133  ;;  %v1136_v47 = vpop.permute.xlu0 %1135 }
 0x270   :  { %v1275_v1 = vadd.f32 %v2343_v21, %v1250_v45  ;;  %1335 = vrot.lane.b32.xlu0 %v1307_v17, %s2013_s4  ;;  %v1175_v50 = vadd.f32 %v1134_v62, %v2224_v22  ;;  %v1176_v51 = vadd.f32 %v1136_v47, %v2227_v38 }
 0x272   :  { %v1291_v49 = vmax.f32 %v1275_v1, 0.0 }
 0x273   :  { %v1214_v53 = vpop.permute.xlu1 %1213  ;;  %v1216_v0 = vpop.permute.xlu0 %1215 }
 0x274   :  { %v1255_v60 = vadd.f32 %v1214_v53, %v1175_v50  ;;  %v1256_v29 = vadd.f32 %v1216_v0, %v1176_v51  ;;  %v1306_v63 = vpack.c.bf16 %v1291_v49, %v1290_v11 }
 0x276   :  { %v1280_v3 = vadd.f32 %v2343_v21, %v1255_v60  ;;  %v1281_v2 = vadd.f32 %v2343_v21, %v1256_v29  ;;  %1333 = vrot.lane.b32.xlu1 %v1306_v63, %s2013_s4 }
 0x277   :  { %v1130_v4 = vpop.permute.xlu1 %1129  ;;  %v1132_v5 = vpop.permute.xlu0 %1131 }
 0x278   :  { %v1296_v6 = vmax.f32 %v1280_v3, 0.0  ;;  %v1297_v7 = vmax.f32 %v1281_v2, 0.0  ;;  %v1173_v9 = vadd.f32 %v1130_v4, %v2242_v52  ;;  %v1174_v22 = vadd.f32 %v1132_v5, %v2245_v54 }
 0x27a   :  { %v1309_v38 = vpack.c.bf16 %v1297_v7, %v1296_v6 }
 0x27b   :  { %v1210_v10 = vpop.permute.xlu1 %1209  ;;  %v1212_v12 = vpop.permute.xlu0 %1211 }
 0x27c   :  { %v1253_v13 = vadd.f32 %v1210_v10, %v1173_v9  ;;  %v1254_v14 = vadd.f32 %v1212_v12, %v1174_v22  ;;  %1339 = vrot.lane.b32.xlu0 %v1309_v38, %s2013_s4 }
 0x27e   :  { %v1278_v15 = vadd.f32 %v2343_v21, %v1253_v13  ;;  %v1279_v57 = vadd.f32 %v2343_v21, %v1254_v14 }
 0x27f   :  { %v1142_v59 = vpop.permute.xlu1 %1141  ;;  %v1144_v19 = vpop.permute.xlu0 %1143 }
 0x280   :  { %v1294_v20 = vmax.f32 %v1278_v15, 0.0  ;;  %v1295_v23 = vmax.f32 %v1279_v57, 0.0  ;;  %v1179_v24 = vadd.f32 %v1142_v59, %v2262_v16  ;;  %v1180_v52 = vadd.f32 %v1144_v19, %v2264_v18  ;;  %v2399_v57 = vld [vmem:[%s2453_s6] ss:$0 sm:$0xff]  ;;  %v1956_v19 = vld [vmem:[%s2447_s0 + $0x8] sm:$0xff]  }
 0x282   :  { %v1308_v54 = vpack.c.bf16 %v1295_v23, %v1294_v20  ;;  %v60_v20 = vunpack.c.l.bf16 %v1956_v19 }
 0x283   :  { %v1222_v25 = vpop.permute.xlu1 %1221  ;;  %v1224_v26 = vpop.permute.xlu0 %1223 }
 0x284   :  { %v1259_v27 = vadd.f32 %v1222_v25, %v1179_v24  ;;  %v1260_v28 = vadd.f32 %v1224_v26, %v1180_v52  ;;  %1337 = vrot.lane.b32.xlu1 %v1308_v54, %s2013_s4  ;;  %v1957_v52 = vld [vmem:[%s2447_s0] sm:$0xff]   ;;  %v61_v26 = vunpack.c.h.bf16 %v1956_v19 }
 0x285   :  { %v58_v54 = vunpack.c.l.bf16 %v1957_v52 }
 0x286   :  { %v1284_v30 = vadd.f32 %v2343_v21, %v1259_v27  ;;  %v1285_v58 = vadd.f32 %v2343_v21, %v1260_v28  ;;  %v59_v28 = vunpack.c.h.bf16 %v1957_v52 }
 0x287   :  { %v1138_v61 = vpop.permute.xlu1 %1137  ;;  %v1140_v33 = vpop.permute.xlu0 %1139 }
 0x288   :  { %v1300_v34 = vmax.f32 %v1284_v30, 0.0  ;;  %v1301_v35 = vmax.f32 %v1285_v58, 0.0  ;;  %v1177_v36 = vadd.f32 %v1138_v61, %v2278_v31  ;;  %v1178_v16 = vadd.f32 %v1140_v33, %v2281_v32 }
 0x28a   :  { %v1311_v18 = vpack.c.bf16 %v1301_v35, %v1300_v34 }
 0x28b   :  { %v1218_v8 = vpop.permute.xlu1 %1217  ;;  %v1220_v37 = vpop.permute.xlu0 %1219 }
 0x28c   :  { %v1257_v39 = vadd.f32 %v1218_v8, %v1177_v36  ;;  %v1258_v40 = vadd.f32 %v1220_v37, %v1178_v16  ;;  %1343 = vrot.lane.b32.xlu0 %v1311_v18, %s2013_s4 }
 0x28e   :  { %v1282_v41 = vadd.f32 %v2343_v21, %v1257_v39  ;;  %v1283_v42 = vadd.f32 %v2343_v21, %v1258_v40 }
 0x28f   :  { %v1150_v43 = vpop.permute.xlu1 %1149  ;;  %v1152_v44 = vpop.permute.xlu0 %1151 }
 0x290   :  { %v1298_v45 = vmax.f32 %v1282_v41, 0.0  ;;  %v1299_v17 = vmax.f32 %v1283_v42, 0.0  ;;  %v1183_v53 = vadd.f32 %v1150_v43, %v2296_v46  ;;  %v1184_v0 = vadd.f32 %v1152_v44, %v2301_v48  ;;  %v1958_v42 = vld [vmem:[%s2447_s0 + $0x18] sm:$0xff]  }
 0x291   :  { %v64_v43 = vunpack.c.l.bf16 %v1958_v42 }
 0x292   :  { %v1310_v62 = vpack.c.bf16 %v1299_v17, %v1298_v45  ;;  %v1959_v17 = vld [vmem:[%s2447_s0 + $0x10] sm:$0xff]  }
 0x293   :  { %v1146_v47 = vpop.permute.xlu1 %1145  ;;  %v1148_v31 = vpop.permute.xlu0 %1147 }
 0x294   :  { %1341 = vrot.lane.b32.xlu1 %v1310_v62, %s2013_s4  ;;  %v1181_v32 = vadd.f32 %v1146_v47, %v2308_v55  ;;  %v1182_v1 = vadd.f32 %v1148_v31, %v2311_v56  ;;  %v62_v62 = vunpack.c.l.bf16 %v1959_v17  ;;  %v65_v31 = vunpack.c.h.bf16 %v1958_v42 }
 0x297   :  { %v1226_v11 = vpop.permute.xlu1 %1225  ;;  %v1228_v49 = vpop.permute.xlu0 %1227 }
 0x298   :  { %v1261_v50 = vadd.f32 %v1226_v11, %v1181_v32  ;;  %v1262_v51 = vadd.f32 %v1228_v49, %v1182_v1  ;;  %v63_v49 = vunpack.c.h.bf16 %v1959_v17 }
 0x29a   :  { %v1286_v60 = vadd.f32 %v2343_v21, %v1261_v50  ;;  %v1287_v29 = vadd.f32 %v2343_v21, %v1262_v51 }
 0x29b   :  { %v1230_v63 = vpop.permute.xlu1 %1229  ;;  %v1232_v3 = vpop.permute.xlu0 %1231 }
 0x29c   :  { %v1302_v2 = vmax.f32 %v1286_v60, 0.0  ;;  %v1303_v4 = vmax.f32 %v1287_v29, 0.0  ;;  %v1263_v5 = vadd.f32 %v1230_v63, %v1183_v53  ;;  %v1264_v55 = vadd.f32 %v1232_v3, %v1184_v0 }
 0x29e   :  { %v1288_v56 = vadd.f32 %v2343_v21, %v1263_v5  ;;  %v1289_v6 = vadd.f32 %v2343_v21, %v1264_v55  ;;  %v1312_v7 = vpack.c.bf16 %v1303_v4, %v1302_v2 }
 0x2a0   :  { %v1304_v9 = vmax.f32 %v1288_v56, 0.0  ;;  %v1305_v22 = vmax.f32 %v1289_v6, 0.0  ;;  %1345 = vrot.lane.b32.xlu1 %v1312_v7, %s2013_s4  ;;  %v1960_v56 = vld [vmem:[%s2447_s0 + $0x28] sm:$0xff]  }
 0x2a1   :  { %v68_v6 = vunpack.c.l.bf16 %v1960_v56 }
 0x2a2   :  { %v1313_v46 = vpack.c.bf16 %v1305_v22, %v1304_v9  ;;  %v1961_v22 = vld [vmem:[%s2447_s0 + $0x20] sm:$0xff]  }
 0x2a4   :  { %1347 = vrot.lane.b32.xlu0 %v1313_v46, %s2013_s4  ;;  %v66_v46 = vunpack.c.l.bf16 %v1961_v22 }
 0x2e2   :  { %v1336_v38 = vpop.permute.xlu0 %1335 }
 0x2e8   :  { %v1334_v48 = vpop.permute.xlu1 %1333 }
 0x2e9   :  { %1877 = vmatprep.mubr.msk.bf16.mxu1 %vm485_vm1, %v1334_v48 }
 0x2ea   :  { %1878 = vmatmul.mubr.msk.bf16.vlgmr.msra.gmra.mxu1 %vm485_vm1, %v1336_v38  ;;  %v69_v38 = vunpack.c.h.bf16 %v1960_v56 }
 0x2ee   :  { %v1340_v12 = vpop.permute.xlu0 %1339 }
 0x2f6   :  { %v1338_v10 = vpop.permute.xlu1 %1337 }
 0x2f7   :  { %1881 = vmatprep.mubr.msk.bf16.mxu1 %vm485_vm1, %v1338_v10 }
 0x2f8   :  { %1882 = vmatmul.mubr.msk.bf16.gmra.mxu1 %vm485_vm1, %v1340_v12 }
 0x2fe   :  { %v1344_v13 = vpop.permute.xlu0 %1343 }
 0x306   :  { %v1342_v21 = vpop.permute.xlu1 %1341 }
 0x307   :  { %1885 = vmatprep.mubr.msk.bf16.mxu1 %vm485_vm1, %v1342_v21 }
 0x308   :  { %1886 = vmatmul.mubr.msk.bf16.gmra.mxu1 %vm485_vm1, %v1344_v13  ;;  %v67_v13 = vunpack.c.h.bf16 %v1961_v22 }
 0x312   :  { %v1346_v14 = vpop.permute.xlu1 %1345 }
 0x313   :  { %1889 = vmatprep.mubr.msk.bf16.mxu1 %vm485_vm1, %v1346_v14 }
 0x316   :  { %v1348_v15 = vpop.permute.xlu0 %1347 }
 0x317   :  { %1890 = vmatmul.mubr.msk.bf16.gmra.mxu1 %vm485_vm1, %v1348_v15 }
 0x3aa   :  { %v1879_v59 = vpop.f32.mrf.mxu1 }
 0x3ab   :  { %v1428_v23 = vadd.f32 %v1879_v59, %v2399_v57 }
 0x3ac   :  { %v1419_v24 = vpop.f32.mrf.mxu1 }
 0x3ad   :  { %v1420_v25 = vadd.f32 %v2399_v57, %v1419_v24  ;;  %v1484_v30 = vadd.f32 %v1428_v23, %v60_v20 }
 0x3ae   :  { %v1880_v27 = vpop.f32.mrf.mxu1 }
 0x3af   :  { %v1431_v58 = vadd.f32 %v1880_v27, %v2399_v57  ;;  %v1482_v33 = vadd.f32 %v1420_v25, %v58_v54  ;;  %v1500_v36 = vmax.f32 %v1484_v30, 0.0 }
 0x3b0   :  { %v1422_v61 = vpop.f32.mrf.mxu1 }
 0x3b1   :  { %v1485_v34 = vadd.f32 %v1431_v58, %v61_v26  ;;  %v1423_v35 = vadd.f32 %v2399_v57, %v1422_v61  ;;  %v1498_v8 = vmax.f32 %v1482_v33, 0.0  ;;  %v1963_v33 = vld [vmem:[%s2447_s0 + $0x30] sm:$0xff]  }
 0x3b3   :  { %v1501_v16 = vmax.f32 %v1485_v34, 0.0  ;;  %v1483_v18 = vadd.f32 %v1423_v35, %v59_v28  ;;  %v1962_v28 = vld [vmem:[%s2447_s0 + $0x38] sm:$0xff]   ;;  %v70_v34 = vunpack.c.l.bf16 %v1963_v33  ;;  %s1984_s0 = scalar_lea.vmem %s1552_s2, 1024 }
 0x3b4   :  { %v72_v30 = vunpack.c.l.bf16 %v1962_v28  ;;  %p1985_p5 = scmp.ne.s32.totalorder %s1552_s2, %s1984_s0  ;;  %p1990_p7 = scmp.lt.s32.totalorder %s1984_s0, %s1984_s0 }
 0x3b5   :  { %v1686_v37 = vpack.c.bf16 %v1501_v16, %v1500_v36  ;;  %v1499_v39 = vmax.f32 %v1483_v18, 0.0  ;;  %v73_v36 = vunpack.c.h.bf16 %v1962_v28 }
 0x3b6   :  { %p1991_p8 = por %p1990_p7, %p1989_p6 }
 0x3b7   :  { %1718 = vst [vmem:[#allocation6 + $0x8] sm:$0xff] %v1686_v37   ;;  %v1681_v40 = vpack.c.bf16 %v1499_v39, %v1498_v8  ;;  %v71_v37 = vunpack.c.h.bf16 %v1963_v33 }
 0x3b8   :  { %v1883_v41 = vpop.f32.mrf.mxu1  ;;  %p1992_p9 = pnand %p1991_p8, %p1985_p5 }
 0x3b9   :  { %1682 = vst [vmem:[#allocation6] sm:$0xff] %v1681_v40   ;;  %v1444_v44 = vadd.f32 %v1883_v41, %v2399_v57 }
 0x3ba   :  { %v1435_v45 = vpop.f32.mrf.mxu1 }
 0x3bb   :  { %v1436_v47 = vadd.f32 %v2399_v57, %v1435_v45  ;;  %v1488_v1 = vadd.f32 %v1444_v44, %v64_v43 }
 0x3bc   :  { %v1884_v32 = vpop.f32.mrf.mxu1 }
 0x3bd   :  { %v1447_v11 = vadd.f32 %v1884_v32, %v2399_v57  ;;  %v1486_v51 = vadd.f32 %v1436_v47, %v62_v62  ;;  %v1504_v60 = vmax.f32 %v1488_v1, 0.0 }
 0x3be   :  { %v1438_v50 = vpop.f32.mrf.mxu1 }
 0x3bf   :  { %v1489_v53 = vadd.f32 %v1447_v11, %v65_v31  ;;  %v1439_v0 = vadd.f32 %v2399_v57, %v1438_v50  ;;  %v1502_v3 = vmax.f32 %v1486_v51, 0.0 }
 0x3c1   :  { %v1505_v29 = vmax.f32 %v1489_v53, 0.0  ;;  %v1487_v63 = vadd.f32 %v1439_v0, %v63_v49 }
 0x3c3   :  { %v1696_v2 = vpack.c.bf16 %v1505_v29, %v1504_v60  ;;  %v1503_v4 = vmax.f32 %v1487_v63, 0.0 }
 0x3c5   :  { %1720 = vst [vmem:[#allocation6 + $0x18] sm:$0xff] %v1696_v2   ;;  %v1691_v5 = vpack.c.bf16 %v1503_v4, %v1502_v3 }
 0x3c7   :  { %1719 = vst [vmem:[#allocation6 + $0x10] sm:$0xff] %v1691_v5  }
 0x3c8   :  { %v1887_v55 = vpop.f32.mrf.mxu1 }
 0x3c9   :  { %v1460_v7 = vadd.f32 %v1887_v55, %v2399_v57 }
 0x3ca   :  { %v1451_v9 = vpop.f32.mrf.mxu1 }
 0x3cb   :  { %v1452_v48 = vadd.f32 %v2399_v57, %v1451_v9  ;;  %v1492_v12 = vadd.f32 %v1460_v7, %v68_v6 }
 0x3cc   :  { %v1888_v10 = vpop.f32.mrf.mxu1 }
 0x3cd   :  { %v1463_v21 = vadd.f32 %v1888_v10, %v2399_v57  ;;  %v1490_v15 = vadd.f32 %v1452_v48, %v66_v46  ;;  %v1508_v20 = vmax.f32 %v1492_v12, 0.0 }
 0x3ce   :  { %v1454_v14 = vpop.f32.mrf.mxu1 }
 0x3cf   :  { %v1493_v59 = vadd.f32 %v1463_v21, %v69_v38  ;;  %v1455_v19 = vadd.f32 %v2399_v57, %v1454_v14  ;;  %v1506_v52 = vmax.f32 %v1490_v15, 0.0 }
 0x3d1   :  { %v1509_v23 = vmax.f32 %v1493_v59, 0.0  ;;  %v1491_v24 = vadd.f32 %v1455_v19, %v67_v13 }
 0x3d3   :  { %v1706_v54 = vpack.c.bf16 %v1509_v23, %v1508_v20  ;;  %v1507_v25 = vmax.f32 %v1491_v24, 0.0 }
 0x3d5   :  { %1722 = vst [vmem:[#allocation6 + $0x28] sm:$0xff] %v1706_v54   ;;  %v1701_v26 = vpack.c.bf16 %v1507_v25, %v1506_v52 }
 0x3d7   :  { %1721 = vst [vmem:[#allocation6 + $0x20] sm:$0xff] %v1701_v26   ;;  %v1891_v27 = vpop.f32.mrf.mxu1 }
 0x3d8   :  { %v1476_v58 = vadd.f32 %v1891_v27, %v2399_v57 }
 0x3d9   :  { %v1467_v61 = vpop.f32.mrf.mxu1 }
 0x3da   :  { %v1468_v35 = vadd.f32 %v2399_v57, %v1467_v61  ;;  %v1496_v18 = vadd.f32 %v1476_v58, %v72_v30 }
 0x3db   :  { %v1892_v16 = vpop.f32.mrf.mxu1 }
 0x3dc   :  { %v1479_v8 = vadd.f32 %v1892_v16, %v2399_v57  ;;  %v1494_v40 = vadd.f32 %v1468_v35, %v70_v34  ;;  %v1512_v43 = vmax.f32 %v1496_v18, 0.0 }
 0x3dd   :  { %v1470_v39 = vpop.f32.mrf.mxu1 }
 0x3de   :  { %v1497_v41 = vadd.f32 %v1479_v8, %v73_v36  ;;  %v1471_v42 = vadd.f32 %v2399_v57, %v1470_v39  ;;  %v1510_v17 = vmax.f32 %v1494_v40, 0.0 }
 0x3e0   :  { %v1513_v44 = vmax.f32 %v1497_v41, 0.0  ;;  %v1495_v45 = vadd.f32 %v1471_v42, %v71_v37 }
 0x3e2   :  { %v1716_v62 = vpack.c.bf16 %v1513_v44, %v1512_v43  ;;  %v1511_v47 = vmax.f32 %v1495_v45, 0.0 }
 0x3e4   :  { %1724 = vst [vmem:[#allocation6 + $0x38] sm:$0xff] %v1716_v62   ;;  %v1711_v31 = vpack.c.bf16 %v1511_v47, %v1510_v17 }
 0x3e6   :  { %1723 = vst [vmem:[#allocation6 + $0x30] sm:$0xff] %v1711_v31  }
 0x3e7   :  { %1995 = shalt.err (!%p1992_p9)
}
 0x3e8   :  { %1557 = dma.vmem_to_hbm [thread:$0]  %s1552_s2, 1024, %s2454_s7, [#allocation5], %s2009_s27, %s2009_s27, %s2010_s28  }
 0x3e9   :  { %2006 = dma.done.wait [#allocation5], 1024  }
 0x3ea   :  { %2007 = vsyncadd [#allocation5], 4294966272 }
 0x3eb   :  { %1561 = vsyncpa [#allocation4], 1 }
 0x3ec   :  { %1562 = vsyncpa [#allocation5], 1 }

</bundles_post_ra>
